<compile_context>
chip_gen: v6e
topology: v6e:2x2x1
jax: 0.10.0
libtpu: 0.0.40
codegen_flags: <defaults>
</compile_context>

<pallas_src>
import jax
import jax.numpy as jnp
from jax import lax
from jax.experimental import pallas as pl
from jax.experimental.pallas import tpu as pltpu


def _round_up(x, m):
    return ((x + m - 1) // m) * m


def _largest_divisor_leq(n, cap):
    cap = max(1, min(n, cap))
    for d in range(cap, 0, -1):
        if n % d == 0:
            return d
    return 1


def _wape_kernel(embs_ref, wt_ref, b_ref, out_ref, attn_ref):
    # embs_ref: (BB, T, E)    wt_ref: (E, TV)    b_ref: (1, TV)
    # out_ref : (BB, T, TV)   attn_ref: (BB, T, E) f32 scratch (persists across v steps)
    v = pl.program_id(1)

    @pl.when(v == 0)
    def _compute_attention():
        bb, t, _ = embs_ref.shape
        q_ids = lax.broadcasted_iota(jnp.int32, (t, t), 0)
        k_ids = lax.broadcasted_iota(jnp.int32, (t, t), 1)
        tril = k_ids <= q_ids
        for i in range(bb):  # static unroll, bb is small (<= 8)
            e = embs_ref[i].astype(jnp.float32)                       # (T, E)
            # weights[q, k] = <e[q], e[k]>  — contract on E, no explicit transpose
            w = lax.dot_general(
                e, e,
                dimension_numbers=(((1,), (1,)), ((), ())),
                preferred_element_type=jnp.float32)                   # (T_q, T_k)
            # fused: causal-masked entries AND genuine zero dot products -> -inf
            # (exactly replicates the PyTorch `weights == 0.0 -> -inf` quirk)
            w = jnp.where(tril & (w != 0.0), w, -jnp.inf)
            # softmax over dim=1 of (b, q, k) == the query axis == axis 0 here
            m = jnp.max(w, axis=0, keepdims=True)                     # (1, T_k)
            ex = jnp.exp(w - m)                                       # exp(-inf) -> 0
            denom = jnp.sum(ex, axis=0, keepdims=True)
            probs = ex * pl.reciprocal(denom, approx=False)
            # attn[w, e] = sum_p probs[w, p] * e[p, e]
            attn_ref[i] = jnp.dot(probs, e, preferred_element_type=jnp.float32)

    bb, t, tv = out_ref.shape
    e_dim = attn_ref.shape[-1]
    # flatten batch-block into the MXU M dimension: (BB*T, E) @ (E, TV)
    acts = attn_ref[...].reshape(bb * t, e_dim)
    logits = jnp.dot(acts, wt_ref[...], preferred_element_type=jnp.float32)
    logits = logits + b_ref[...]                                      # (1, TV) bias
    out_ref[...] = logits.reshape(bb, t, tv).astype(out_ref.dtype)


def weighted_average_prev_embeddings_lm(x_tokens, emb_table, lin_w, lin_b,
                                        *, tv=None, bb=None):
    """
    x_tokens : (B, T) int32 token ids
    emb_table: (V, E) float32   (nn.Embedding weight)
    lin_w    : (V, E) float32   (nn.Linear weight, PyTorch layout)
    lin_b    : (V,)   float32
    returns  : (B, T, V) float32 logits
    """
    B, T = x_tokens.shape
    V, E = emb_table.shape

    # Embedding gather in plain JAX glue.
    embs = jnp.take(emb_table, x_tokens, axis=0).astype(jnp.float32)   # (B, T, E)

    # Vocab tiling: TV multiple of 128 (lane-dense output stores), V padded to TV.
    if tv is None:
        tv = min(512, _round_up(V, 128))
    tv = _round_up(tv, 128)
    v_pad = _round_up(V, tv)

    # NOTE: for static weights, hoist this transpose/pad outside the jitted forward.
    wt = jnp.pad(lin_w.T.astype(jnp.float32), ((0, 0), (0, v_pad - V)))  # (E, V_pad)
    b2 = jnp.pad(lin_b.astype(jnp.float32), (0, v_pad - V)).reshape(1, v_pad)

    # Batch packing: BB rows per grid step so the projection matmul M dim is BB*T.
    if bb is None:
        bb = _largest_divisor_leq(B, max(1, min(8, 256 // max(T, 1))))
    nb = B // bb
    nv = v_pad // tv

    # Scoped VMEM limit sized to the chip generation (v7x has only 64 MiB physical).
    try:
        vmem_cap = int(pltpu.get_tpu_info().vmem_capacity_bytes)
    except Exception:
        vmem_cap = 64 * 1024 * 1024
    vmem_limit = max(32 * 1024 * 1024,
                     min(vmem_cap - (16 << 20), 100 * 1024 * 1024))

    grid_spec = pltpu.PrefetchScalarGridSpec(
        num_scalar_prefetch=0,
        grid=(nb, nv),
        in_specs=[
            pl.BlockSpec((bb, T, E), lambda b, v: (b, 0, 0)),   # embeddings
            pl.BlockSpec((E, tv), lambda b, v: (0, v)),          # weight tile (streamed)
            pl.BlockSpec((1, tv), lambda b, v: (0, v)),          # bias tile
        ],
        out_specs=pl.BlockSpec((bb, T, tv), lambda b, v: (b, 0, v)),
        scratch_shapes=[pltpu.VMEM((bb, T, E), jnp.float32)],    # attention result
    )

    logits_pad = pl.pallas_call(
        _wape_kernel,
        out_shape=jax.ShapeDtypeStruct((B, T, v_pad), jnp.float32),
        grid_spec=grid_spec,
        compiler_params=pltpu.CompilerParams(
            dimension_semantics=("parallel", "arbitrary"),
            vmem_limit_bytes=vmem_limit,
        ),
    )(embs, wt, b2)

    return logits_pad[..., :V]


def reference_forward(x_tokens, emb_table, lin_w, lin_b):
    """Pure-JAX reference replicating the PyTorch forward exactly (f32 precision)."""
    hp = jax.lax.Precision.HIGHEST
    embs = jnp.take(emb_table, x_tokens, axis=0)                    # (B, T, E)
    _, T, _ = embs.shape
    mask = jnp.tril(jnp.ones((T, T), jnp.float32))
    w = jnp.einsum('bqe,bke->bqk', embs, embs, precision=hp)
    w = w * mask[None, :, :]
    w = jnp.where(w == 0.0, -jnp.inf, w)
    w = jax.nn.softmax(w, axis=1)                                   # dim=1 (q axis)
    out = jnp.einsum('bpe,bwp->bwe', embs, w, precision=hp)
    logits = jnp.einsum('bwe,ve->bwv', out, lin_w, precision=hp) + lin_b
    return logits


if __name__ == "__main__":
    key = jax.random.PRNGKey(0)
    k_emb, k_w, k_b, k_x = jax.random.split(key, 4)

    # --- Test 1: module-default toy shapes -------------------------------------
    vocab_sz, emb_sz, bs, mcw = 32, 16, 2, 8
    emb_table = jax.random.normal(k_emb, (vocab_sz, emb_sz), jnp.float32)
    bound = 1.0 / jnp.sqrt(emb_sz)
    lin_w = jax.random.uniform(k_w, (vocab_sz, emb_sz), jnp.float32, -bound, bound)
    lin_b = jax.random.uniform(k_b, (vocab_sz,), jnp.float32, -bound, bound)
    x = jax.random.randint(k_x, (bs, mcw), 0, vocab_sz, jnp.int32)

    logits = jax.block_until_ready(
        weighted_average_prev_embeddings_lm(x, emb_table, lin_w, lin_b))
    ref = reference_forward(x, emb_table, lin_w, lin_b)
    assert logits.shape == (bs, mcw, vocab_sz), logits.shape
    assert jnp.allclose(logits, ref, atol=1e-4, rtol=1e-4), \
        float(jnp.max(jnp.abs(logits - ref)))

    # --- Test 2: exercise multi-tile vocab axis (nv > 1) and batch packing -----
    vocab2, bs2 = 300, 4
    k_emb2, k_w2, k_b2, k_x2 = jax.random.split(jax.random.PRNGKey(1), 4)
    emb_table2 = jax.random.normal(k_emb2, (vocab2, emb_sz), jnp.float32)
    lin_w2 = jax.random.uniform(k_w2, (vocab2, emb_sz), jnp.float32, -bound, bound)
    lin_b2 = jax.random.uniform(k_b2, (vocab2,), jnp.float32, -bound, bound)
    x2 = jax.random.randint(k_x2, (bs2, mcw), 0, vocab2, jnp.int32)

    logits2 = jax.block_until_ready(
        weighted_average_prev_embeddings_lm(x2, emb_table2, lin_w2, lin_b2, tv=128))
    ref2 = reference_forward(x2, emb_table2, lin_w2, lin_b2)
    assert logits2.shape == (bs2, mcw, vocab2), logits2.shape
    assert jnp.allclose(logits2, ref2, atol=1e-4, rtol=1e-4), \
        float(jnp.max(jnp.abs(logits2 - ref2)))

    print("KERNEL_OK")
</pallas_src>

<mosaic_0001>
module attributes {stable_mosaic.version = 11 : i64} {
  func.func @_wape_kernel(%arg0: i32, %arg1: i32, %arg2: memref<2x8x16xf32, #tpu.memory_space<vmem>>, %arg3: memref<16x128xf32, #tpu.memory_space<vmem>>, %arg4: memref<1x128xf32, #tpu.memory_space<vmem>>, %arg5: memref<2x8x128xf32, #tpu.memory_space<vmem>>, %arg6: memref<2x8x16xf32, #tpu.memory_space<vmem>>) attributes {dimension_semantics = [#tpu.dimension_semantics<parallel>, #tpu.dimension_semantics<arbitrary>], iteration_bounds = array<i64: 1, 1>, scalar_prefetch = 0 : i64, scratch_operands = 1 : i64, tpu.core_type = #tpu.core_type<tc>, window_params = [{transform_indices = @transform_0, window_bounds = array<i64: 2, 8, 16>}, {transform_indices = @transform_1, window_bounds = array<i64: 16, 128>}, {transform_indices = @transform_2, window_bounds = array<i64: 1, 128>}, {transform_indices = @transform_3, window_bounds = array<i64: 2, 8, 128>}]} {
    %c0_i32 = arith.constant 0 : i32
    %0 = arith.cmpi eq, %arg1, %c0_i32 : i32
    %1 = arith.extui %0 : i1 to i32
    %c0_i32_0 = arith.constant 0 : i32
    %2 = arith.cmpi ne, %1, %c0_i32_0 : i32
    scf.if %2 {
      %12 = tpu.iota {dimensions = array<i32: 0>} : vector<8x8xi32>
      %13 = tpu.iota {dimensions = array<i32: 1>} : vector<8x8xi32>
      %14 = arith.cmpi sle, %13, %12 : vector<8x8xi32>
      %c0_10 = arith.constant 0 : index
      %c0_11 = arith.constant 0 : index
      %c0_12 = arith.constant 0 : index
      %15 = vector.load %arg2[%c0_10, %c0_11, %c0_12] : memref<2x8x16xf32, #tpu.memory_space<vmem>>, vector<1x8x16xf32>
      %16 = vector.shape_cast %15 : vector<1x8x16xf32> to vector<8x16xf32>
      %cst_13 = arith.constant dense<0.000000e+00> : vector<8x8xf32>
      %17 = tpu.matmul %16, %16, %cst_13 {dimension_numbers = #tpu.dot_dimension_numbers<[1], [1], [0], [0], [0, 0, 1, 0], [], []>} : vector<8x16xf32>, vector<8x16xf32>, vector<8x8xf32> -> vector<8x8xf32>
      %cst_14 = arith.constant 0.000000e+00 : f32
      %18 = vector.broadcast %cst_14 : f32 to vector<8x8xf32>
      %19 = arith.cmpf one, %17, %18 : vector<8x8xf32>
      %20 = arith.andi %14, %19 : vector<8x8xi1>
      %cst_15 = arith.constant 0xFF800000 : f32
      %21 = vector.broadcast %cst_15 : f32 to vector<8x8xf32>
      %22 = arith.select %20, %17, %21 : vector<8x8xi1>, vector<8x8xf32>
      %cst_16 = arith.constant dense<0xFF800000> : vector<8xf32>
      %23 = vector.multi_reduction <maximumf>, %22, %cst_16 [0] : vector<8x8xf32> to vector<8xf32>
      %24 = vector.shape_cast %23 : vector<8xf32> to vector<1x8xf32>
      %25 = vector.broadcast %24 : vector<1x8xf32> to vector<8x8xf32>
      %26 = arith.subf %22, %25 : vector<8x8xf32>
      %27 = math.exp %26 : vector<8x8xf32>
      %cst_17 = arith.constant dense<0.000000e+00> : vector<8xf32>
      %28 = vector.multi_reduction <add>, %27, %cst_17 [0] : vector<8x8xf32> to vector<8xf32>
      %29 = vector.shape_cast %28 : vector<8xf32> to vector<1x8xf32>
      %30 = tpu.reciprocal %29 : vector<1x8xf32> -> vector<1x8xf32>
      %31 = vector.broadcast %30 : vector<1x8xf32> to vector<8x8xf32>
      %32 = arith.mulf %27, %31 : vector<8x8xf32>
      %cst_18 = arith.constant dense<0.000000e+00> : vector<8x16xf32>
      %33 = tpu.matmul %32, %16, %cst_18 {dimension_numbers = #tpu.dot_dimension_numbers<[1], [0], [0], [1], [0, 0, 1, 1], [], []>} : vector<8x8xf32>, vector<8x16xf32>, vector<8x16xf32> -> vector<8x16xf32>
      %c0_19 = arith.constant 0 : index
      %c0_20 = arith.constant 0 : index
      %c0_21 = arith.constant 0 : index
      %34 = vector.load %arg6[%c0_19, %c0_20, %c0_21] : memref<2x8x16xf32, #tpu.memory_space<vmem>>, vector<1x8x16xf32>
      %35 = vector.shape_cast %34 : vector<1x8x16xf32> to vector<8x16xf32>
      %36 = vector.shape_cast %33 : vector<8x16xf32> to vector<1x8x16xf32>
      tpu.vector_store %arg6[%c0_19, %c0_20, %c0_21], %36 {strides = array<i32>} : memref<2x8x16xf32, #tpu.memory_space<vmem>>, vector<1x8x16xf32>,
      %c1 = arith.constant 1 : index
      %c0_22 = arith.constant 0 : index
      %c0_23 = arith.constant 0 : index
      %37 = vector.load %arg2[%c1, %c0_22, %c0_23] : memref<2x8x16xf32, #tpu.memory_space<vmem>>, vector<1x8x16xf32>
      %38 = vector.shape_cast %37 : vector<1x8x16xf32> to vector<8x16xf32>
      %cst_24 = arith.constant dense<0.000000e+00> : vector<8x8xf32>
      %39 = tpu.matmul %38, %38, %cst_24 {dimension_numbers = #tpu.dot_dimension_numbers<[1], [1], [0], [0], [0, 0, 1, 0], [], []>} : vector<8x16xf32>, vector<8x16xf32>, vector<8x8xf32> -> vector<8x8xf32>
      %cst_25 = arith.constant 0.000000e+00 : f32
      %40 = vector.broadcast %cst_25 : f32 to vector<8x8xf32>
      %41 = arith.cmpf one, %39, %40 : vector<8x8xf32>
      %42 = arith.andi %14, %41 : vector<8x8xi1>
      %cst_26 = arith.constant 0xFF800000 : f32
      %43 = vector.broadcast %cst_26 : f32 to vector<8x8xf32>
      %44 = arith.select %42, %39, %43 : vector<8x8xi1>, vector<8x8xf32>
      %cst_27 = arith.constant dense<0xFF800000> : vector<8xf32>
      %45 = vector.multi_reduction <maximumf>, %44, %cst_27 [0] : vector<8x8xf32> to vector<8xf32>
      %46 = vector.shape_cast %45 : vector<8xf32> to vector<1x8xf32>
      %47 = vector.broadcast %46 : vector<1x8xf32> to vector<8x8xf32>
      %48 = arith.subf %44, %47 : vector<8x8xf32>
      %49 = math.exp %48 : vector<8x8xf32>
      %cst_28 = arith.constant dense<0.000000e+00> : vector<8xf32>
      %50 = vector.multi_reduction <add>, %49, %cst_28 [0] : vector<8x8xf32> to vector<8xf32>
      %51 = vector.shape_cast %50 : vector<8xf32> to vector<1x8xf32>
      %52 = tpu.reciprocal %51 : vector<1x8xf32> -> vector<1x8xf32>
      %53 = vector.broadcast %52 : vector<1x8xf32> to vector<8x8xf32>
      %54 = arith.mulf %49, %53 : vector<8x8xf32>
      %cst_29 = arith.constant dense<0.000000e+00> : vector<8x16xf32>
      %55 = tpu.matmul %54, %38, %cst_29 {dimension_numbers = #tpu.dot_dimension_numbers<[1], [0], [0], [1], [0, 0, 1, 1], [], []>} : vector<8x8xf32>, vector<8x16xf32>, vector<8x16xf32> -> vector<8x16xf32>
      %c1_30 = arith.constant 1 : index
      %c0_31 = arith.constant 0 : index
      %c0_32 = arith.constant 0 : index
      %56 = vector.load %arg6[%c1_30, %c0_31, %c0_32] : memref<2x8x16xf32, #tpu.memory_space<vmem>>, vector<1x8x16xf32>
      %57 = vector.shape_cast %56 : vector<1x8x16xf32> to vector<8x16xf32>
      %58 = vector.shape_cast %55 : vector<8x16xf32> to vector<1x8x16xf32>
      tpu.vector_store %arg6[%c1_30, %c0_31, %c0_32], %58 {strides = array<i32>} : memref<2x8x16xf32, #tpu.memory_space<vmem>>, vector<1x8x16xf32>,
    } else {
    }
    %c0 = arith.constant 0 : index
    %c0_1 = arith.constant 0 : index
    %c0_2 = arith.constant 0 : index
    %3 = vector.load %arg6[%c0, %c0_1, %c0_2] : memref<2x8x16xf32, #tpu.memory_space<vmem>>, vector<2x8x16xf32>
    %4 = vector.shape_cast %3 : vector<2x8x16xf32> to vector<16x16xf32>
    %c0_3 = arith.constant 0 : index
    %c0_4 = arith.constant 0 : index
    %5 = vector.load %arg3[%c0_3, %c0_4] : memref<16x128xf32, #tpu.memory_space<vmem>>, vector<16x128xf32>
    %cst = arith.constant dense<0.000000e+00> : vector<16x128xf32>
    %6 = tpu.matmul %4, %5, %cst {dimension_numbers = #tpu.dot_dimension_numbers<[1], [0], [0], [1], [0, 0, 1, 1], [], []>} : vector<16x16xf32>, vector<16x128xf32>, vector<16x128xf32> -> vector<16x128xf32>
    %c0_5 = arith.constant 0 : index
    %c0_6 = arith.constant 0 : index
    %7 = vector.load %arg4[%c0_5, %c0_6] : memref<1x128xf32, #tpu.memory_space<vmem>>, vector<1x128xf32>
    %8 = vector.broadcast %7 : vector<1x128xf32> to vector<16x128xf32>
    %9 = arith.addf %6, %8 : vector<16x128xf32>
    %10 = vector.shape_cast %9 : vector<16x128xf32> to vector<2x8x128xf32>
    %c0_7 = arith.constant 0 : index
    %c0_8 = arith.constant 0 : index
    %c0_9 = arith.constant 0 : index
    %11 = vector.load %arg5[%c0_7, %c0_8, %c0_9] : memref<2x8x128xf32, #tpu.memory_space<vmem>>, vector<2x8x128xf32>
    tpu.vector_store %arg5[%c0_7, %c0_8, %c0_9], %10 {strides = array<i32>} : memref<2x8x128xf32, #tpu.memory_space<vmem>>, vector<2x8x128xf32>,
    return
  }
  func.func @transform_0(%arg0: i32, %arg1: i32) -> (i32, i32, i32) {
    %c0_i32 = arith.constant 0 : i32
    %c0_i32_0 = arith.constant 0 : i32
    %c0_i32_1 = arith.constant 0 : i32
    return %arg0, %c0_i32, %c0_i32_0 : i32, i32, i32
  }
  func.func @transform_1(%arg0: i32, %arg1: i32) -> (i32, i32) {
    %c0_i32 = arith.constant 0 : i32
    %c0_i32_0 = arith.constant 0 : i32
    return %c0_i32, %arg1 : i32, i32
  }
  func.func @transform_2(%arg0: i32, %arg1: i32) -> (i32, i32) {
    %c0_i32 = arith.constant 0 : i32
    %c0_i32_0 = arith.constant 0 : i32
    return %c0_i32, %arg1 : i32, i32
  }
  func.func @transform_3(%arg0: i32, %arg1: i32) -> (i32, i32, i32) {
    %c0_i32 = arith.constant 0 : i32
    %c0_i32_0 = arith.constant 0 : i32
    return %arg0, %c0_i32, %arg1 : i32, i32, i32
  }
}

</mosaic_0001>

<bundles_post_ra>
// kernel: tpu_custom_call.1
= control target key start
LH: loop header
LB: loop body
LE: loop exit
PB: predicated region body
PF: predicated region fallthrough
CT: control target
= control target key end

     0   :  { %8 = vsyncpa [#allocation4], 0  ;;  %s706_s0 = inlined_call_operand.hbm [shape: f32[2,8,16], index: 0, kind: input, shape index: {}]   ;;  %s707_s1 = inlined_call_operand.hbm [shape: f32[16,128], index: 1, kind: input, shape index: {}]   ;;  %s708_s2 = inlined_call_operand.vmem [shape: f32[1,128], index: 2, kind: input, shape index: {}]   ;;  %s709_s3 = inlined_call_operand.hbm [shape: f32[2,8,128], index: 3, kind: output, shape index: {}]  }
   0x1   :  { %9 = vsyncpa [#allocation7], 0 }
   0x2   :  { %10 = vsyncpa [#allocation5], 0  ;;  %s638_s12 = smov [#allocation3]  }
   0x3   :  { %s16_s13 = sshll.u32 %s638_s12, 4  ;;  %s17_s13 = int_to_ptr.vmem [resolvable:$true] %s16_s13 }
   0x4   :  { %s580_s14 = scalar_lea.vmem %s17_s13, 256  ;;  %p585_p1 = scmp.lt.s32.totalorder %s17_s13, %s17_s13 }
   0x5   :  { %p581_p0 = scmp.ne.s32.totalorder %s17_s13, %s580_s14  ;;  %p586_p2 = scmp.lt.s32.totalorder %s580_s14, %s580_s14 }
   0x7   :  { %p587_p3 = por %p586_p2, %p585_p1 }
   0x9   :  { %p588_p4 = pnand %p587_p3, %p581_p0 }
   0xb   :  { %591 = shalt.err (!%p588_p4)
}
   0xc   :  { %s639_s15 = smov 128   ;;  %s640_s16 = smov 8  }
   0xd   :  { %22 = dma.hbm_to_vmem [thread:$0]  %s706_s0, 256, %s17_s13, [#allocation4], %s639_s15, %s639_s15, %s640_s16  }
   0xe   :  { %s641_s19 = smov [#allocation6]  }
   0xf   :  { %s28_s20 = sshll.u32 %s641_s19, 4  ;;  %s29_s20 = int_to_ptr.vmem [resolvable:$true] %s28_s20 }
  0x10   :  { %s600_s21 = scalar_lea.vmem %s29_s20, 256  ;;  %p605_p6 = scmp.lt.s32.totalorder %s29_s20, %s29_s20 }
  0x11   :  { %p601_p5 = scmp.ne.s32.totalorder %s29_s20, %s600_s21  ;;  %p606_p7 = scmp.lt.s32.totalorder %s600_s21, %s600_s21 }
  0x13   :  { %p607_p8 = por %p606_p7, %p605_p6 }
  0x15   :  { %p608_p9 = pnand %p607_p8, %p601_p5 }
  0x17   :  { %611 = shalt.err (!%p608_p9)
}
  0x18   :  { %34 = dma.hbm_to_vmem [thread:$0]  %s707_s1, 256, %s29_s20, [#allocation7], %s639_s15, %s639_s15, %s640_s16  }
  0x19   :  { %632 = dma.done.wait [#allocation4], 256  }
  0x1a   :  { %633 = vsyncadd [#allocation4], 4294967040 }
  0x1b   :  { %634 = dma.done.wait [#allocation7], 256  }
  0x1c   :  { %635 = vsyncadd [#allocation7], 4294967040  ;;  %v642_v0 = vmov 0.0   ;;  %vm643_vm0 = vmmov 0   ;;  %vm53_vm1 = vcmask 130048   ;;  %v52_v1 = vld [vmem:[#allocation3] sm:$0xff]  ;;  %v47_v3 = vlaneseq }
  0x1d   :  { %530 = vmatprep.subr.mxu0 %v642_v0  ;;  %532 = vmatprep.mubr.msk.f32.mxu0 %vm643_vm0, %v642_v0  ;;  %v225_v2 = vld [vmem:[#allocation3 + $0x8] sm:$0xff]  ;;  %vm130_vm4 = vcmask 64512   ;;  %v399_v53 = vld [vmem:[#allocation6 + $0x8] sm:$0xff]  ;;  %v398_v54 = vld [vmem:[#allocation6] sm:$0xff]  ;;  %s644_s24 = smov [#allocation8]  }
  0x1e   :  { %535 = vmatprep.subr.mxu1 %v642_v0  ;;  %537 = vmatprep.mubr.msk.f32.mxu1 %vm643_vm0, %v642_v0  ;;  %v48_v4 = vshrl.u32 %v47_v3, 7  ;;  %v50_v5 = vand.u32 127, %v47_v3  ;;  %v515_v58 = vld [vmem:[%s708_s2] ss:$0 sm:$0xff]  ;;  %s496_s25 = sshll.u32 %s644_s24, 4  ;;  %s497_s25 = int_to_ptr.vmem [resolvable:$true] %s496_s25 }
  0x1f   :  { %531 = vmatpush3.xpose.msk.msra.mxu0 %vm53_vm1, %v52_v1  ;;  %536 = vmatpush3.msra.mxu1 %v52_v1  ;;  %s612_s26 = scalar_lea.vmem %s497_s25, 256  ;;  %p617_p11 = scmp.lt.s32.totalorder %s497_s25, %s497_s25 }
  0x20   :  { %540 = vmatprep.subr.mxu1 %v642_v0  ;;  %545 = vmatprep.subr.mxu0 %v642_v0  ;;  %vm51_vm2 = vcmp.le.s32.totalorder %v50_v5, %v48_v4  ;;  %p613_p10 = scmp.ne.s32.totalorder %s497_s25, %s612_s26  ;;  %p618_p12 = scmp.lt.s32.totalorder %s612_s26, %s612_s26 }
  0x22   :  { %533 = vmatmul.mubr.msk.f32.vlgmr.msra.gmra.mxu0 %vm53_vm1, %v52_v1  ;;  %p619_p13 = por %p618_p12, %p617_p11 }
  0x23   :  { %547 = vmatprep.mubr.msk.f32.mxu0 %vm643_vm0, %v642_v0  ;;  %546 = vmatpush3.msra.mxu0 %v225_v2 }
  0x24   :  { %p620_p0 = pnand %p619_p13, %p613_p10 }
  0xe2   :  { %v123_v6 = vpop.f32.mrf.mxu0 }
  0xe3   :  { %vm127_vm3 = vcmp.ne.f32.partialorder %v123_v6, 0.0 }
  0xe4   :  { %vm128_vm5 = vmand %vm51_vm2, %vm127_vm3  ;;  %v534_v7 = vpop.f32.mrf.mxu0 }
  0xe5   :  { %v129_v8 = vsel %vm128_vm5, %v123_v6, -inf }
  0xe6   :  { %v131_v9 = vsel %vm130_vm4, %v129_v8, -inf }
  0xe7   :  { %v132_v10 = vrot.slane %v131_v9, 4 }
  0xe9   :  { %v133_v11 = vmax.f32 %v131_v9, %v132_v10 }
  0xeb   :  { %v134_v12 = vrot.slane %v133_v11, 2 }
  0xed   :  { %v135_v13 = vmax.f32 %v133_v11, %v134_v12 }
  0xef   :  { %v136_v14 = vrot.slane %v135_v13, 1 }
  0xf1   :  { %v137_v15 = vmax.f32 %v135_v13, %v136_v14 }
  0xf3   :  { %v138_v16 = vsub.f32 %v129_v8, %v137_v15 }
  0xf5   :  { %v139_v17 = vmul.f32 1.442695, %v138_v16 }
  0xf7   :  { %564 = vpow2.f32 %v139_v17 }
 0x104   :  { %v565_v18 = vpop.eup %564 }
 0x105   :  { %v141_v19 = vsel %vm130_vm4, %v565_v18, 0.0 }
 0x106   :  { %v142_v20 = vrot.slane %v141_v19, 4 }
 0x108   :  { %v143_v21 = vadd.f32 %v142_v20, %v141_v19 }
 0x10a   :  { %v144_v22 = vrot.slane %v143_v21, 2 }
 0x10c   :  { %v145_v23 = vadd.f32 %v144_v22, %v143_v21 }
 0x10e   :  { %v146_v24 = vrot.slane %v145_v23, 1 }
 0x110   :  { %v147_v25 = vadd.f32 %v146_v24, %v145_v23 }
 0x112   :  { %566 = vrcp.f32 %v147_v25 }
 0x11f   :  { %v567_v26 = vpop.eup %566 }
 0x120   :  { %v149_v27 = vmul.f32 %v567_v26, %v565_v18 }
 0x122   :  { %538 = vmatmul.mubr.msk.f32.vlgmr.msra.gmra.mxu1 %vm130_vm4, %v149_v27 }
 0x123   :  { %541 = vmatpush3.xpose.msk.msra.mxu1 %vm53_vm1, %v225_v2  ;;  %542 = vmatprep.mubr.msk.f32.mxu1 %vm643_vm0, %v642_v0 }
 0x124   :  { %550 = vmatprep.subr.mxu1 %v399_v53 }
 0x126   :  { %543 = vmatmul.mubr.msk.f32.vlgmr.msra.gmra.mxu1 %vm53_vm1, %v225_v2 }
 0x127   :  { %551 = vmatpush3.msra.mxu1 %v399_v53 }
 0x128   :  { %552 = vmatprep.subr.mxu1 %v398_v54 }
 0x129   :  { %553 = vmatpush3.msra.mxu1 %v398_v54 }
 0x1e2   :  { %v219_v28 = vpop.f32.mrf.mxu1 }
 0x1e3   :  { %223 = vst.msk [vmem:[#allocation2] sm:$0xff] %vm53_vm1, %v219_v28 }
 0x1e4   :  { %v539_v29 = vpop.f32.mrf.mxu1 }
 0x1e6   :  { %v295_v30 = vpop.f32.mrf.mxu1 }
 0x1e7   :  { %vm299_vm6 = vcmp.ne.f32.partialorder %v295_v30, 0.0 }
 0x1e8   :  { %vm300_vm7 = vmand %vm51_vm2, %vm299_vm6  ;;  %v544_v31 = vpop.f32.mrf.mxu1 }
 0x1e9   :  { %v301_v32 = vsel %vm300_vm7, %v295_v30, -inf }
 0x1ea   :  { %v302_v33 = vsel %vm130_vm4, %v301_v32, -inf  ;;  %v396_v34 = vld [vmem:[#allocation2] sm:$0xff] }
 0x1eb   :  { %v303_v35 = vrot.slane %v302_v33, 4  ;;  %554 = vmatprep.mubr.msk.f32.mxu1 %vm53_vm1, %v396_v34 }
 0x1ed   :  { %v304_v36 = vmax.f32 %v302_v33, %v303_v35 }
 0x1ef   :  { %v305_v37 = vrot.slane %v304_v36, 2 }
 0x1f1   :  { %v306_v38 = vmax.f32 %v304_v36, %v305_v37 }
 0x1f3   :  { %v307_v39 = vrot.slane %v306_v38, 1 }
 0x1f5   :  { %v308_v40 = vmax.f32 %v306_v38, %v307_v39 }
 0x1f7   :  { %v309_v41 = vsub.f32 %v301_v32, %v308_v40 }
 0x1f9   :  { %v310_v42 = vmul.f32 1.442695, %v309_v41 }
 0x1fb   :  { %568 = vpow2.f32 %v310_v42 }
 0x208   :  { %v569_v43 = vpop.eup %568 }
 0x209   :  { %v312_v44 = vsel %vm130_vm4, %v569_v43, 0.0 }
 0x20a   :  { %v313_v45 = vrot.slane %v312_v44, 4 }
 0x20c   :  { %v314_v46 = vadd.f32 %v313_v45, %v312_v44 }
 0x20e   :  { %v315_v47 = vrot.slane %v314_v46, 2 }
 0x210   :  { %v316_v48 = vadd.f32 %v315_v47, %v314_v46 }
 0x212   :  { %v317_v49 = vrot.slane %v316_v48, 1 }
 0x214   :  { %v318_v50 = vadd.f32 %v317_v49, %v316_v48 }
 0x216   :  { %570 = vrcp.f32 %v318_v50 }
 0x223   :  { %v571_v51 = vpop.eup %570 }
 0x224   :  { %v320_v52 = vmul.f32 %v571_v51, %v569_v43 }
 0x226   :  { %548 = vmatmul.mubr.msk.f32.vlgmr.msra.gmra.mxu0 %vm130_vm4, %v320_v52 }
 0x2e6   :  { %v390_v55 = vpop.f32.mrf.mxu0 }
 0x2e7   :  { %395 = vst.msk [vmem:[#allocation2 + $0x8] sm:$0xff] %vm53_vm1, %v390_v55 }
 0x2e8   :  { %v549_v56 = vpop.f32.mrf.mxu0 }
 0x2ee   :  { %v397_v57 = vld [vmem:[#allocation2 + $0x8] sm:$0xff] }
 0x2ef   :  { %555 = vmatmul.mubr.msk.f32.vlgmr.msra.gmra.mxu1 %vm53_vm1, %v397_v57 }
 0x3af   :  { %v556_v59 = vpop.f32.mrf.mxu1 }
 0x3b0   :  { %v486_v60 = vadd.f32 %v556_v59, %v515_v58 }
 0x3b1   :  { %v480_v61 = vpop.f32.mrf.mxu1 }
 0x3b2   :  { %490 = vst [vmem:[#allocation8 + $0x8] sm:$0xff] %v486_v60  ;;  %v481_v62 = vadd.f32 %v515_v58, %v480_v61 }
 0x3b4   :  { %489 = vst [vmem:[#allocation8] sm:$0xff] %v481_v62 }
 0x3b5   :  { %623 = shalt.err (!%p620_p0)
}
 0x3b6   :  { %502 = dma.vmem_to_hbm [thread:$0]  %s497_s25, 256, %s709_s3, [#allocation5], %s639_s15, %s639_s15, %s640_s16  }
 0x3b7   :  { %636 = dma.done.wait [#allocation5], 256  }
 0x3b8   :  { %637 = vsyncadd [#allocation5], 4294967040 }
 0x3b9   :  { %506 = vsyncpa [#allocation4], 1 }
 0x3ba   :  { %507 = vsyncpa [#allocation7], 1 }
 0x3bb   :  { %508 = vsyncpa [#allocation5], 1 }

</bundles_post_ra>
